<compile_context>
chip_gen: v7x
topology: tpu7x:2x2x1
jax: 0.10.0
libtpu: 0.0.40
codegen_flags: <defaults>
</compile_context>

<pallas_src>
import jax
import jax.numpy as jnp
from jax.experimental import pallas as pl
from jax.experimental.pallas import tpu as pltpu


def _basic_block_kernel(x_ref, w1_ref, w2_ref, bn1_ref, bn2_ref, o_ref):
    # x_ref/o_ref: (bt, L, C); w{1,2}_ref: (3C, C); bn{1,2}_ref: (2, 1, C)
    bt, L, C = x_ref.shape
    M = bt * L

    scale1 = bn1_ref[0]   # (1, C) -> broadcasts over (M, C)
    shift1 = bn1_ref[1]
    scale2 = bn2_ref[0]
    shift2 = bn2_ref[1]

    # Per-sample boundary masks on the flattened row axis.
    row = jax.lax.broadcasted_iota(jnp.int32, (M, 1), 0)
    is_first = (row % L) == 0          # l == 0      -> x[l-1] is zero padding
    is_last = (row % L) == (L - 1)     # l == L - 1  -> x[l+1] is zero padding

    mxu_dtype = w1_ref.dtype

    def conv3(h):
        """3-tap conv with zero padding as one (M, 3C) x (3C, C) MXU matmul."""
        # XLU rotations; wrapped rows are exactly the masked padding rows.
        h_prev = jnp.where(is_first, 0.0, pltpu.roll(h, shift=1, axis=0))
        h_next = jnp.where(is_last, 0.0, pltpu.roll(h, shift=M - 1, axis=0))
        h3 = jnp.concatenate([h_prev, h, h_next], axis=-1).astype(mxu_dtype)
        return h3

    x = x_ref[...].reshape(M, C).astype(jnp.float32)

    y = jnp.dot(conv3(x), w1_ref[...], preferred_element_type=jnp.float32)
    y = jnp.maximum(y * scale1 + shift1, 0.0)                 # bn1 + relu
    y = jnp.dot(conv3(y), w2_ref[...], preferred_element_type=jnp.float32)
    y = y * scale2 + shift2                                    # bn2
    out = jnp.maximum(y + x, 0.0)                              # residual + relu
    o_ref[...] = out.reshape(bt, L, C).astype(o_ref.dtype)


def _pick_batch_tile(batch, per_batch_bytes, target_bytes=2 << 20):
    """Pick a batch tile sized toward `target_bytes` of input per grid step.

    Kept at ~2 MiB (not larger): the fused K=3C operand triples the live
    intermediate inside the kernel, and the grid is capped to >= 2 steps so
    both v7x TensorCores get work.
    """
    bt = int(max(1, min(batch, target_bytes // max(per_batch_bytes, 1))))
    if batch >= 2:
        bt = min(bt, batch // 2)       # keep at least 2 grid steps
    bt = max(bt, 1)
    while batch % bt:                  # must divide the batch
        bt -= 1
    return bt


def basic_block_nlc(x_nlc, w1, bn1, w2, bn2, *, eps=1e-5,
                    mxu_dtype=jnp.float32):
    """BasicBlock forward on channels-last input.

    x_nlc : (B, L, C)
    w1, w2: (C, C, 3)  conv weights, PyTorch (out, in, k) layout
    bn1, bn2: tuples (gamma, beta, running_mean, running_var), each (C,)
    mxu_dtype: dtype of the matmul operands (f32 default; bf16 for speed).
    """
    B, L, C = x_nlc.shape
    assert w1.shape == (C, C, 3) and w2.shape == (C, C, 3)

    # Fold BatchNorm (inference mode) into per-channel scale/shift.
    def fold(bn):
        gamma, beta, mean, var = bn
        scale = (gamma / jnp.sqrt(var + eps)).astype(jnp.float32)
        shift = (beta - mean * scale).astype(jnp.float32)
        return jnp.stack([scale, shift], axis=0).reshape(2, 1, C)

    bn1_f = fold(bn1)
    bn2_f = fold(bn2)

    # (C_out, C_in, 3) -> (3, C_in, C_out) -> (3*C_in, C_out): one fused
    # right-matmul per conv; K order matches concat([x_prev, x, x_next]).
    w1_f = jnp.transpose(w1, (2, 1, 0)).reshape(3 * C, C).astype(mxu_dtype)
    w2_f = jnp.transpose(w2, (2, 1, 0)).reshape(3 * C, C).astype(mxu_dtype)

    per_batch_bytes = L * C * x_nlc.dtype.itemsize
    bt = _pick_batch_tile(B, per_batch_bytes)
    grid = (B // bt,)

    return pl.pallas_call(
        _basic_block_kernel,
        out_shape=jax.ShapeDtypeStruct((B, L, C), x_nlc.dtype),
        grid=grid,
        in_specs=[
            pl.BlockSpec((bt, L, C), lambda b: (b, 0, 0)),
            pl.BlockSpec((3 * C, C), lambda b: (0, 0)),
            pl.BlockSpec((3 * C, C), lambda b: (0, 0)),
            pl.BlockSpec((2, 1, C), lambda b: (0, 0, 0)),
            pl.BlockSpec((2, 1, C), lambda b: (0, 0, 0)),
        ],
        out_specs=pl.BlockSpec((bt, L, C), lambda b: (b, 0, 0)),
        compiler_params=pltpu.CompilerParams(
            dimension_semantics=("parallel",),
            vmem_limit_bytes=48 << 20),      # fits v7x's 64 MiB VMEM
    )(x_nlc, w1_f, w2_f, bn1_f, bn2_f)


def basic_block(x, w1, bn1, w2, bn2, *, eps=1e-5, mxu_dtype=jnp.float32):
    """BasicBlock forward with the PyTorch NCL interface.

    x : (B, C, L). For stacked blocks prefer `basic_block_nlc` to avoid
    per-block layout transposes.
    """
    x_t = jnp.transpose(x, (0, 2, 1))                       # (B, L, C)
    out_t = basic_block_nlc(x_t, w1, bn1, w2, bn2, eps=eps,
                            mxu_dtype=mxu_dtype)
    return jnp.transpose(out_t, (0, 2, 1))                  # back to (B, C, L)


def basic_block_ref(x, w1, bn1, w2, bn2, *, eps=1e-5):
    """Pure-JAX reference mirroring the PyTorch forward (eval-mode BN)."""
    def conv3(h, w):
        return jax.lax.conv_general_dilated(
            h, w, window_strides=(1,), padding=((1, 1),),
            dimension_numbers=("NCH", "OIH", "NCH"),
            precision=jax.lax.Precision.HIGHEST)

    def bn(h, p):
        gamma, beta, mean, var = p
        return ((h - mean[None, :, None])
                / jnp.sqrt(var[None, :, None] + eps)
                * gamma[None, :, None] + beta[None, :, None])

    out = jax.nn.relu(bn(conv3(x, w1), bn1))
    out = bn(conv3(out, w2), bn2)
    return jax.nn.relu(out + x)


if __name__ == "__main__":
    # Small but lane-dense shapes: 128 channels (typical BasicBlock width),
    # short ECG segment of length 64, batch 2 (-> grid of 2 parallel steps).
    B, C, L = 2, 128, 64

    key = jax.random.PRNGKey(0)
    ks = jax.random.split(key, 12)

    x = jax.random.normal(ks[0], (B, C, L), dtype=jnp.float32)
    w1 = 0.05 * jax.random.normal(ks[1], (C, C, 3), dtype=jnp.float32)
    w2 = 0.05 * jax.random.normal(ks[2], (C, C, 3), dtype=jnp.float32)

    bn1 = (1.0 + 0.1 * jax.random.normal(ks[3], (C,), dtype=jnp.float32),  # gamma
           0.1 * jax.random.normal(ks[4], (C,), dtype=jnp.float32),        # beta
           0.1 * jax.random.normal(ks[5], (C,), dtype=jnp.float32),        # running_mean
           jax.random.uniform(ks[6], (C,), jnp.float32, 0.5, 1.5))         # running_var
    bn2 = (1.0 + 0.1 * jax.random.normal(ks[7], (C,), dtype=jnp.float32),
           0.1 * jax.random.normal(ks[8], (C,), dtype=jnp.float32),
           0.1 * jax.random.normal(ks[9], (C,), dtype=jnp.float32),
           jax.random.uniform(ks[10], (C,), jnp.float32, 0.5, 1.5))

    out = jax.block_until_ready(basic_block(x, w1, bn1, w2, bn2))
    ref = basic_block_ref(x, w1, bn1, w2, bn2)

    assert out.shape == (B, C, L)
    assert jnp.allclose(out, ref, atol=5e-4, rtol=5e-4), "mismatch vs reference"

    print("KERNEL_OK")
</pallas_src>

<mosaic_0001>
module attributes {stable_mosaic.version = 11 : i64} {
  func.func @_basic_block_kernel(%arg0: i32, %arg1: memref<1x64x128xf32, #tpu.memory_space<vmem>>, %arg2: memref<384x128xf32, #tpu.memory_space<vmem>>, %arg3: memref<384x128xf32, #tpu.memory_space<vmem>>, %arg4: memref<2x1x128xf32, #tpu.memory_space<vmem>>, %arg5: memref<2x1x128xf32, #tpu.memory_space<vmem>>, %arg6: memref<1x64x128xf32, #tpu.memory_space<vmem>>) attributes {dimension_semantics = [#tpu.dimension_semantics<parallel>], iteration_bounds = array<i64: 2>, scalar_prefetch = 0 : i64, scratch_operands = 0 : i64, tpu.core_type = #tpu.core_type<tc>, window_params = [{transform_indices = @transform_0, window_bounds = array<i64: 1, 64, 128>}, {pipeline_mode = #tpu.pipeline_mode<synchronous>, transform_indices = @transform_1, window_bounds = array<i64: 384, 128>}, {pipeline_mode = #tpu.pipeline_mode<synchronous>, transform_indices = @transform_2, window_bounds = array<i64: 384, 128>}, {pipeline_mode = #tpu.pipeline_mode<synchronous>, transform_indices = @transform_3, window_bounds = array<i64: 2, 1, 128>}, {pipeline_mode = #tpu.pipeline_mode<synchronous>, transform_indices = @transform_4, window_bounds = array<i64: 2, 1, 128>}, {transform_indices = @transform_5, window_bounds = array<i64: 1, 64, 128>}]} {
    %c0 = arith.constant 0 : index
    %c0_0 = arith.constant 0 : index
    %c0_1 = arith.constant 0 : index
    %0 = vector.load %arg4[%c0, %c0_0, %c0_1] : memref<2x1x128xf32, #tpu.memory_space<vmem>>, vector<1x1x128xf32>
    %1 = vector.shape_cast %0 : vector<1x1x128xf32> to vector<1x128xf32>
    %c1 = arith.constant 1 : index
    %c0_2 = arith.constant 0 : index
    %c0_3 = arith.constant 0 : index
    %2 = vector.load %arg4[%c1, %c0_2, %c0_3] : memref<2x1x128xf32, #tpu.memory_space<vmem>>, vector<1x1x128xf32>
    %3 = vector.shape_cast %2 : vector<1x1x128xf32> to vector<1x128xf32>
    %c0_4 = arith.constant 0 : index
    %c0_5 = arith.constant 0 : index
    %c0_6 = arith.constant 0 : index
    %4 = vector.load %arg5[%c0_4, %c0_5, %c0_6] : memref<2x1x128xf32, #tpu.memory_space<vmem>>, vector<1x1x128xf32>
    %5 = vector.shape_cast %4 : vector<1x1x128xf32> to vector<1x128xf32>
    %c1_7 = arith.constant 1 : index
    %c0_8 = arith.constant 0 : index
    %c0_9 = arith.constant 0 : index
    %6 = vector.load %arg5[%c1_7, %c0_8, %c0_9] : memref<2x1x128xf32, #tpu.memory_space<vmem>>, vector<1x1x128xf32>
    %7 = vector.shape_cast %6 : vector<1x1x128xf32> to vector<1x128xf32>
    %8 = tpu.iota {dimensions = array<i32: 0>} : vector<64x1xi32>
    %c64_i32 = arith.constant 64 : i32
    %c0_i32 = arith.constant 0 : i32
    %9 = arith.cmpi eq, %c64_i32, %c0_i32 : i32
    %c1_i32 = arith.constant 1 : i32
    %10 = arith.select %9, %c1_i32, %c64_i32 : i32
    %11 = vector.broadcast %10 : i32 to vector<64x1xi32>
    %12 = arith.remsi %8, %11 : vector<64x1xi32>
    %c0_i32_10 = arith.constant 0 : i32
    %13 = vector.broadcast %c0_i32_10 : i32 to vector<64x1xi32>
    %14 = arith.cmpi ne, %12, %13 : vector<64x1xi32>
    %c0_i32_11 = arith.constant 0 : i32
    %15 = vector.broadcast %c0_i32_11 : i32 to vector<64x1xi32>
    %16 = arith.cmpi slt, %12, %15 : vector<64x1xi32>
    %c0_i32_12 = arith.constant 0 : i32
    %17 = arith.cmpi slt, %10, %c0_i32_12 : i32
    %18 = vector.broadcast %17 : i1 to vector<64x1xi1>
    %19 = vector.broadcast %18 : vector<64x1xi1> to vector<64x1xi1>
    %20 = arith.xori %16, %19 : vector<64x1xi1>
    %21 = arith.andi %20, %14 : vector<64x1xi1>
    %22 = vector.broadcast %10 : i32 to vector<64x1xi32>
    %23 = arith.addi %12, %22 : vector<64x1xi32>
    %24 = arith.select %21, %23, %12 : vector<64x1xi1>, vector<64x1xi32>
    %c0_i32_13 = arith.constant 0 : i32
    %25 = vector.broadcast %c0_i32_13 : i32 to vector<64x1xi32>
    %26 = arith.cmpi eq, %24, %25 : vector<64x1xi32>
    %c64_i32_14 = arith.constant 64 : i32
    %c0_i32_15 = arith.constant 0 : i32
    %27 = arith.cmpi eq, %c64_i32_14, %c0_i32_15 : i32
    %c1_i32_16 = arith.constant 1 : i32
    %28 = arith.select %27, %c1_i32_16, %c64_i32_14 : i32
    %29 = vector.broadcast %28 : i32 to vector<64x1xi32>
    %30 = arith.remsi %8, %29 : vector<64x1xi32>
    %c0_i32_17 = arith.constant 0 : i32
    %31 = vector.broadcast %c0_i32_17 : i32 to vector<64x1xi32>
    %32 = arith.cmpi ne, %30, %31 : vector<64x1xi32>
    %c0_i32_18 = arith.constant 0 : i32
    %33 = vector.broadcast %c0_i32_18 : i32 to vector<64x1xi32>
    %34 = arith.cmpi slt, %30, %33 : vector<64x1xi32>
    %c0_i32_19 = arith.constant 0 : i32
    %35 = arith.cmpi slt, %28, %c0_i32_19 : i32
    %36 = vector.broadcast %35 : i1 to vector<64x1xi1>
    %37 = vector.broadcast %36 : vector<64x1xi1> to vector<64x1xi1>
    %38 = arith.xori %34, %37 : vector<64x1xi1>
    %39 = arith.andi %38, %32 : vector<64x1xi1>
    %40 = vector.broadcast %28 : i32 to vector<64x1xi32>
    %41 = arith.addi %30, %40 : vector<64x1xi32>
    %42 = arith.select %39, %41, %30 : vector<64x1xi1>, vector<64x1xi32>
    %c63_i32 = arith.constant 63 : i32
    %43 = vector.broadcast %c63_i32 : i32 to vector<64x1xi32>
    %44 = arith.cmpi eq, %42, %43 : vector<64x1xi32>
    %c0_20 = arith.constant 0 : index
    %c0_21 = arith.constant 0 : index
    %c0_22 = arith.constant 0 : index
    %45 = vector.load %arg1[%c0_20, %c0_21, %c0_22] : memref<1x64x128xf32, #tpu.memory_space<vmem>>, vector<1x64x128xf32>
    %46 = vector.shape_cast %45 : vector<1x64x128xf32> to vector<64x128xf32>
    %c1_i32_23 = arith.constant 1 : i32
    %47 = tpu.dynamic_rotate %46 by %c1_i32_23 dim 0 : vector<64x128xf32>, i32 -> vector<64x128xf32>
    %cst = arith.constant 0.000000e+00 : f32
    %48 = vector.shape_cast %26 : vector<64x1xi1> to vector<64x1xi1>
    %49 = vector.broadcast %48 : vector<64x1xi1> to vector<64x128xi1>
    %50 = vector.broadcast %cst : f32 to vector<64x128xf32>
    %51 = arith.select %49, %50, %47 : vector<64x128xi1>, vector<64x128xf32>
    %c63_i32_24 = arith.constant 63 : i32
    %52 = tpu.dynamic_rotate %46 by %c63_i32_24 dim 0 : vector<64x128xf32>, i32 -> vector<64x128xf32>
    %cst_25 = arith.constant 0.000000e+00 : f32
    %53 = vector.shape_cast %44 : vector<64x1xi1> to vector<64x1xi1>
    %54 = vector.broadcast %53 : vector<64x1xi1> to vector<64x128xi1>
    %55 = vector.broadcast %cst_25 : f32 to vector<64x128xf32>
    %56 = arith.select %54, %55, %52 : vector<64x128xi1>, vector<64x128xf32>
    %57 = tpu.concatenate %51, %46, %56 in 1 : vector<64x128xf32>, vector<64x128xf32>, vector<64x128xf32> -> vector<64x384xf32>
    %c0_26 = arith.constant 0 : index
    %c0_27 = arith.constant 0 : index
    %58 = vector.load %arg2[%c0_26, %c0_27] : memref<384x128xf32, #tpu.memory_space<vmem>>, vector<384x128xf32>
    %cst_28 = arith.constant dense<0.000000e+00> : vector<64x128xf32>
    %59 = tpu.matmul %57, %58, %cst_28 {dimension_numbers = #tpu.dot_dimension_numbers<[1], [0], [0], [1], [0, 0, 1, 1], [], []>} : vector<64x384xf32>, vector<384x128xf32>, vector<64x128xf32> -> vector<64x128xf32>
    %60 = vector.broadcast %1 : vector<1x128xf32> to vector<64x128xf32>
    %61 = arith.mulf %59, %60 : vector<64x128xf32>
    %62 = vector.broadcast %3 : vector<1x128xf32> to vector<64x128xf32>
    %63 = arith.addf %61, %62 : vector<64x128xf32>
    %cst_29 = arith.constant 0.000000e+00 : f32
    %64 = vector.broadcast %cst_29 : f32 to vector<64x128xf32>
    %65 = arith.maximumf %63, %64 : vector<64x128xf32>
    %c1_i32_30 = arith.constant 1 : i32
    %66 = tpu.dynamic_rotate %65 by %c1_i32_30 dim 0 : vector<64x128xf32>, i32 -> vector<64x128xf32>
    %cst_31 = arith.constant 0.000000e+00 : f32
    %67 = vector.shape_cast %26 : vector<64x1xi1> to vector<64x1xi1>
    %68 = vector.broadcast %67 : vector<64x1xi1> to vector<64x128xi1>
    %69 = vector.broadcast %cst_31 : f32 to vector<64x128xf32>
    %70 = arith.select %68, %69, %66 : vector<64x128xi1>, vector<64x128xf32>
    %c63_i32_32 = arith.constant 63 : i32
    %71 = tpu.dynamic_rotate %65 by %c63_i32_32 dim 0 : vector<64x128xf32>, i32 -> vector<64x128xf32>
    %cst_33 = arith.constant 0.000000e+00 : f32
    %72 = vector.shape_cast %44 : vector<64x1xi1> to vector<64x1xi1>
    %73 = vector.broadcast %72 : vector<64x1xi1> to vector<64x128xi1>
    %74 = vector.broadcast %cst_33 : f32 to vector<64x128xf32>
    %75 = arith.select %73, %74, %71 : vector<64x128xi1>, vector<64x128xf32>
    %76 = tpu.concatenate %70, %65, %75 in 1 : vector<64x128xf32>, vector<64x128xf32>, vector<64x128xf32> -> vector<64x384xf32>
    %c0_34 = arith.constant 0 : index
    %c0_35 = arith.constant 0 : index
    %77 = vector.load %arg3[%c0_34, %c0_35] : memref<384x128xf32, #tpu.memory_space<vmem>>, vector<384x128xf32>
    %cst_36 = arith.constant dense<0.000000e+00> : vector<64x128xf32>
    %78 = tpu.matmul %76, %77, %cst_36 {dimension_numbers = #tpu.dot_dimension_numbers<[1], [0], [0], [1], [0, 0, 1, 1], [], []>} : vector<64x384xf32>, vector<384x128xf32>, vector<64x128xf32> -> vector<64x128xf32>
    %79 = vector.broadcast %5 : vector<1x128xf32> to vector<64x128xf32>
    %80 = arith.mulf %78, %79 : vector<64x128xf32>
    %81 = vector.broadcast %7 : vector<1x128xf32> to vector<64x128xf32>
    %82 = arith.addf %80, %81 : vector<64x128xf32>
    %83 = arith.addf %82, %46 : vector<64x128xf32>
    %cst_37 = arith.constant 0.000000e+00 : f32
    %84 = vector.broadcast %cst_37 : f32 to vector<64x128xf32>
    %85 = arith.maximumf %83, %84 : vector<64x128xf32>
    %86 = vector.shape_cast %85 : vector<64x128xf32> to vector<1x64x128xf32>
    %c0_38 = arith.constant 0 : index
    %c0_39 = arith.constant 0 : index
    %c0_40 = arith.constant 0 : index
    %87 = vector.load %arg6[%c0_38, %c0_39, %c0_40] : memref<1x64x128xf32, #tpu.memory_space<vmem>>, vector<1x64x128xf32>
    tpu.vector_store %arg6[%c0_38, %c0_39, %c0_40], %86 {strides = array<i32>} : memref<1x64x128xf32, #tpu.memory_space<vmem>>, vector<1x64x128xf32>,
    return
  }
  func.func @transform_0(%arg0: i32) -> (i32, i32, i32) {
    %c0_i32 = arith.constant 0 : i32
    %c0_i32_0 = arith.constant 0 : i32
    %c0_i32_1 = arith.constant 0 : i32
    return %arg0, %c0_i32, %c0_i32_0 : i32, i32, i32
  }
  func.func @transform_1(%arg0: i32) -> (i32, i32) {
    %c0_i32 = arith.constant 0 : i32
    %c0_i32_0 = arith.constant 0 : i32
    %c0_i32_1 = arith.constant 0 : i32
    return %c0_i32, %c0_i32_0 : i32, i32
  }
  func.func @transform_2(%arg0: i32) -> (i32, i32) {
    %c0_i32 = arith.constant 0 : i32
    %c0_i32_0 = arith.constant 0 : i32
    %c0_i32_1 = arith.constant 0 : i32
    return %c0_i32, %c0_i32_0 : i32, i32
  }
  func.func @transform_3(%arg0: i32) -> (i32, i32, i32) {
    %c0_i32 = arith.constant 0 : i32
    %c0_i32_0 = arith.constant 0 : i32
    %c0_i32_1 = arith.constant 0 : i32
    %c0_i32_2 = arith.constant 0 : i32
    return %c0_i32, %c0_i32_0, %c0_i32_1 : i32, i32, i32
  }
  func.func @transform_4(%arg0: i32) -> (i32, i32, i32) {
    %c0_i32 = arith.constant 0 : i32
    %c0_i32_0 = arith.constant 0 : i32
    %c0_i32_1 = arith.constant 0 : i32
    %c0_i32_2 = arith.constant 0 : i32
    return %c0_i32, %c0_i32_0, %c0_i32_1 : i32, i32, i32
  }
  func.func @transform_5(%arg0: i32) -> (i32, i32, i32) {
    %c0_i32 = arith.constant 0 : i32
    %c0_i32_0 = arith.constant 0 : i32
    %c0_i32_1 = arith.constant 0 : i32
    return %arg0, %c0_i32, %c0_i32_0 : i32, i32, i32
  }
}

</mosaic_0001>

<bundles_post_ra>
// kernel: tpu_custom_call.1
= control target key start
LH: loop header
LB: loop body
LE: loop exit
PB: predicated region body
PF: predicated region fallthrough
CT: control target
= control target key end

     0   :  { %10 = vsyncpa [#allocation3], 0  ;;  %s2417_s0 = inlined_call_operand.hbm [shape: f32[2,64,128], index: 0, kind: input, shape index: {}]   ;;  %s2418_s1 = inlined_call_operand.hbm [shape: f32[384,128], index: 1, kind: input, shape index: {}]   ;;  %s2419_s2 = inlined_call_operand.hbm [shape: f32[384,128], index: 2, kind: input, shape index: {}]   ;;  %s2420_s3 = inlined_call_operand.vmem [shape: f32[2,1,128], index: 3, kind: input, shape index: {}]   ;;  %s2421_s4 = inlined_call_operand.vmem [shape: f32[2,1,128], index: 4, kind: input, shape index: {}]   ;;  %s2422_s5 = inlined_call_operand.hbm [shape: f32[2,64,128], index: 5, kind: output, shape index: {}]  }
   0x1   :  { %12 = vsyncpa [#allocation3 + $0x1], 0 }
   0x2   :  { %13 = vsyncpa [#allocation6], 0 }
   0x3   :  { %14 = vsyncpa [#allocation4], 0 }
   0x4   :  { %16 = vsyncpa [#allocation4 + $0x1], 0  ;;  %s1926_s18 = smov 0   ;;  %s1928_s19 = smov 0  }
   0x5   :  { %s1930_s20 = smov 0   ;;  %s1932_s21 = smov 0  }
   0x6 LB: > { %s1947_s22 = sadd.s32 4294967295, %s1886_s21   ;;  %s1247_s23 = sadd.s32 4294967294, %s1886_s21   ;;  %s1886_s21 = sphi %s1932_s21, %s2446_s21   ;;  %s1882_s20 = sphi %s1930_s20, %s2445_s20   ;;  %s1878_s19 = sphi %s1928_s19, %s2444_s19   ;;  %s1874_s18 = sphi %s1926_s18, %s2443_s18  }
   0x7   : > { %p42_p0 = scmp.ne.s32.totalorder %s1878_s19, %s1874_s18  ;;  %p2423_p1 = scmp.eq.s32.totalorder %s1947_s22, 0 }
   0x8   : > { %p156_p3 = scmp.eq.s32.totalorder %s1247_s23, 1  ;;  %p1248_p5 = scmp.ge.s32.totalorder %s1886_s21, 1 }
   0x9   : > { %p1956_p4 = por %p2423_p1, %p42_p0  ;;  %p163_p7 = scmp.lt.s32.totalorder %s1886_s21, 3 }
   0xa   : > { %p1961_p6 = por %p156_p3, %p42_p0  ;;  %s1888_s27 = smov [#allocation5]  }
   0xb   : > { %s2426_s24 = scalar_select %p1956_p4, 1, 0 }
   0xc   : > { %s2427_s25 = scalar_select %p1961_p6, 1, 0 }
   0xd   : > { %p1966_p8 = pnand %p1248_p5, %p163_p7  ;;  %s175_s28 = sshll.u32 %s1888_s27, 4  ;;  %s1970_s28 = int_to_ptr.vmem [resolvable:$true] %s175_s28 }
   0xe   : > { %s1889_s30 = smov [#allocation7]   ;;  %s1730_s9 = scalar_lea.hbm %s2418_s1, 6144 }
   0xf   : > { %p1671_p9 = pneg %p1966_p8  ;;  %s188_s6 = sshll.u32 %s1889_s30, 4  ;;  %s1981_s6 = int_to_ptr.vmem [resolvable:$true] %s188_s6 }
  0x10   : > { %p1731_p12 = scmp.ne.s32.totalorder %s2418_s1, %s1730_s9  ;;  %p1737_p5 = scmp.lt.u32.totalorder %s1730_s9, %s2418_s1 }
  0x11   : > { %p1977_p11 = pnand %p1671_p9, %p2423_p1 }
  0x13   : > { %p1732_p13 = pneg %p1977_p11 }
  0x15   : > { %p1733_p0 = pnand %p1732_p13, %p1731_p12 }
  0x17   : > { %p1734_p3 = pneg %p1733_p0 }
  0x19   : > { %p1739_p7 = pnand %p1737_p5, %p1734_p3 }
  0x1b   : > { %1742 = shalt.err (!%p1739_p7)
}
  0x1c   : > { %s1743_s14 = scalar_lea.vmem %s1970_s28, 6144  ;;  %p1751_p2 = scmp.lt.s32.totalorder %s1970_s28, %s1970_s28 }
  0x1d   : > { %p1744_p9 = scmp.ne.s32.totalorder %s1970_s28, %s1743_s14  ;;  %p1752_p12 = scmp.lt.s32.totalorder %s1743_s14, %s1743_s14 }
  0x1f   : > { %p1746_p10 = pnand %p1744_p9, %p1732_p13  ;;  %p1753_p0 = por %p1752_p12, %p1751_p2 }
  0x21   : > { %p1747_p1 = pneg %p1746_p10 }
  0x23   : > { %p1754_p6 = pnand %p1753_p0, %p1747_p1 }
  0x25   : > { %1757 = shalt.err (!%p1754_p6)
}
  0x26   : > { %s1890_s15 = smov 128   ;;  %s1891_s16 = smov 8  }
  0x27   : > { %1674 = dma.hbm_to_vmem [thread:$0]  (!%p1977_p11), %s2418_s1, 6144, %s1970_s28, [#allocation6], %s1890_s15, %s1890_s15, %s1891_s16  }
  0x28   : > { %s1758_s7 = scalar_lea.hbm %s2419_s2, 6144 }
  0x29   : > { %p1759_p1 = scmp.ne.s32.totalorder %s2419_s2, %s1758_s7  ;;  %p1765_p10 = scmp.lt.u32.totalorder %s1758_s7, %s2419_s2 }
  0x2b   : > { %p1761_p2 = pnand %p1759_p1, %p1732_p13 }
  0x2d   : > { %p1762_p6 = pneg %p1761_p2 }
  0x2f   : > { %p1767_p3 = pnand %p1765_p10, %p1762_p6 }
  0x31   : > { %1770 = shalt.err (!%p1767_p3)
}
  0x32   : > { %s1771_s28 = scalar_lea.vmem %s1981_s6, 6144  ;;  %p1779_p12 = scmp.lt.s32.totalorder %s1981_s6, %s1981_s6 }
  0x33   : > { %p1772_p5 = scmp.ne.s32.totalorder %s1981_s6, %s1771_s28  ;;  %p1780_p0 = scmp.lt.s32.totalorder %s1771_s28, %s1771_s28 }
  0x35   : > { %p1774_p7 = pnand %p1772_p5, %p1732_p13  ;;  %p1781_p1 = por %p1780_p0, %p1779_p12 }
  0x37   : > { %p1775_p9 = pneg %p1774_p7 }
  0x39   : > { %p1782_p2 = pnand %p1781_p1, %p1775_p9 }
  0x3b   : > { %1785 = shalt.err (!%p1782_p2)
}
  0x3c   : > { %1677 = dma.hbm_to_vmem [thread:$0]  (!%p1977_p11), %s2419_s2, 6144, %s1981_s6, [#allocation6], %s1890_s15, %s1890_s15, %s1891_s16  }
  0x3d   : > { %s2042_s29 = sadd.s32 1, %s1886_s21   ;;  %s29_s14 = sadd.s32 1, %s1882_s20 }
  0x3e   : > { %s26_s17 = ssub.s32 %s1886_s21, %s2042_s29  ;;  %p36_p13 = scmp.ne.s32.totalorder %s1882_s20, %s1878_s19 }
  0x3f   : > { %p27_p6 = scmp.eq.s32.totalorder %s26_s17, 0  ;;  %p37_p10 = scmp.eq.s32.totalorder %s1886_s21, 0 }
  0x40   : > { %p2430_p3 = scmp.eq.s32.totalorder %s1947_s22, 1  ;;  %p1688_p7 = scmp.lt.s32.totalorder %s1886_s21, 2 }
  0x41   : > { %s2058_s27 = scalar_select %p27_p6, %s1882_s20, %s29_s14  }
  0x42   : > { %p2052_p5 = por %p2430_p3, %p36_p13  ;;  %p38_p9 = por %p37_p10, %p36_p13 }
  0x43   : > { %s208_s30 = sand.u32 1, %s1882_s20   ;;  %s1279_s6 = sshll.u32 %s1886_s21, 10 }
  0x44   : > { %s2431_s23 = scalar_select %p2052_p5, 1, 0 }
  0x45   : > { %s1252_s7 = sshll.u32 %s208_s30, 6  ;;  %s2065_s10 = scalar_lea.hbm %s2417_s0, %s1279_s6 }
  0x46   : > { %s212_s11 = scalar_lea.vmem [#allocation2], %s1252_s7  ;;  %p2069_p11 = pnand %p1688_p7, %p38_p9 }
  0x47   : > { %s219_s28 = sshll.u32 %s212_s11, 4  ;;  %s2073_s13 = scalar_lea.sflag [#allocation3], %s208_s30  ;;  %s2067_s28 = int_to_ptr.vmem [resolvable:$true] %s219_s28 }
  0x48   : > { %s1786_s14 = scalar_lea.hbm %s2065_s10, 1024  ;;  %p1788_p0 = pneg %p2069_p11 }
  0x49   : > { %p1787_p12 = scmp.ne.s32.totalorder %s2065_s10, %s1786_s14  ;;  %s1791_s6 = scalar_lea.hbm %s2417_s0, 2048 }
  0x4a   : > { %p1792_p13 = scmp.lt.u32.totalorder %s2065_s10, %s2417_s0  ;;  %p1793_p6 = scmp.lt.u32.totalorder %s1791_s6, %s1786_s14 }
  0x4b   : > { %p1789_p1 = pnand %p1788_p0, %p1787_p12  ;;  %p1795_p3 = scmp.lt.u32.totalorder %s1786_s14, %s2065_s10 }
  0x4c   : > { %p1794_p10 = por %p1793_p6, %p1792_p13 }
  0x4d   : > { %p1790_p2 = pneg %p1789_p1 }
  0x4e   : > { %p1796_p7 = por %p1795_p3, %p1794_p10 }
  0x50   : > { %p1797_p9 = pnand %p1796_p7, %p1790_p2 }
  0x52   : > { %1800 = shalt.err (!%p1797_p9)
}
  0x53   : > { %s1801_s30 = scalar_lea.vmem %s2067_s28, 1024  ;;  %s1892_s11 = smov [#allocation2]  }
  0x54   : > { %p1802_p12 = scmp.ne.s32.totalorder %s2067_s28, %s1801_s30  ;;  %s1806_s17 = sshll.u32 %s1892_s11, 4  ;;  %s1807_s17 = int_to_ptr.vmem [resolvable:$false] %s1806_s17 }
  0x55   : > { %s1808_s7 = scalar_lea.vmem %s1807_s17, 2048  ;;  %p1809_p4 = scmp.lt.s32.totalorder %s2067_s28, %s1807_s17 }
  0x56   : > { %p1804_p1 = pnand %p1802_p12, %p1788_p0  ;;  %p1810_p13 = scmp.lt.s32.totalorder %s1808_s7, %s1801_s30 }
  0x58   : > { %p1805_p5 = pneg %p1804_p1  ;;  %p1811_p6 = por %p1810_p13, %p1809_p4 }
  0x5a   : > { %p1812_p10 = pnand %p1811_p6, %p1805_p5 }
  0x5c   : > { %1815 = shalt.err (!%p1812_p10)
}
  0x5d   : > { %1681 = dma.hbm_to_vmem [thread:$0]  (!%p2069_p11), %s2065_s10, 1024, %s2067_s28, %s2073_s13, %s1890_s15, %s1890_s15, %s1891_s16  }
  0x5e   : > { %231 = sbr.rel (%p1966_p8) target bundleno = 662 (0x296), region = 40  ;;  %s2107_s14 = sand.u32 (!%p1966_p8), 1, %s1878_s19  }
  0x5f   : > { %s1256_s6 = sshll.u32 (!%p1966_p8), %s2107_s14, 6  ;;  %s234_s8 = scalar_lea.sflag (!%p1966_p8), [#allocation3], %s2107_s14 }
  0x60   : > { %s2113_s12 = scalar_lea.vmem (!%p1966_p8), [#allocation2], %s1256_s6  ;;  %p2433_p4 = scmp.ne.s32.totalorder (!%p1966_p8), %s2426_s24, 0 }
  0x65   : > { %1861 = dma.done.wait (%p2433_p4), %s234_s8, 1024  }
  0x66   : > { %1863 = vsyncadd (%p2433_p4), %s234_s8, 4294966272  ;;  %p2434_p5 = scmp.eq.s32.totalorder %s1947_s22, 0 }
  0x68   : > { %1865 = dma.done.wait (%p2434_p5), [#allocation6], 12288   ;;  %p2435_p8 = pmov %p2434_p5 }
  0x69   : > { %v505_v0 = vld [vmem:[#allocation5 + $0x80] sm:$0xff]  ;;  %v506_v1 = vld [vmem:[#allocation5 + $0x88] sm:$0xff]  ;;  %v507_v9 = vld [vmem:[#allocation5 + $0x90] sm:$0xff]  ;;  %v278_v37 = vlaneseq  ;;  %s2336_s30 = scalar_lea.vmem [#allocation8], %s1256_s6  ;;  %s1280_s11 = sshll.u32 %s1947_s22, 10 }
  0x6a   : > { %1867 = vsyncadd (%p2435_p8), [#allocation6], 4294955008  ;;  %v489_v2 = vld [vmem:[#allocation5] sm:$0xff]  ;;  %v1531_v3 = vpack.c.bf16 %v506_v1, %v505_v0  ;;  %v490_v4 = vld [vmem:[#allocation5 + $0x8] sm:$0xff]  ;;  %s1155_s17 = sshll.u32 %s2336_s30, 4  ;;  %s2370_s8 = scalar_lea.hbm %s2422_s5, %s1280_s11  ;;  %s2372_s17 = int_to_ptr.vmem [resolvable:$true] %s1155_s17 }
  0x6b   : > { %v521_v5 = vld [vmem:[#allocation5 + $0x100] sm:$0xff]  ;;  %v522_v6 = vld [vmem:[#allocation5 + $0x108] sm:$0xff]  ;;  %v1533_v7 = vpack.c.bf16 %v490_v4, %v489_v2  ;;  %v508_v10 = vld [vmem:[#allocation5 + $0x98] sm:$0xff]  ;;  %v2123_v47 = vshrl.u32 %v278_v37, 7  ;;  %s1816_s24 = scalar_lea.vmem %s2372_s17, 1024  ;;  %p2440_p0 = scmp.ne.s32.totalorder %s2431_s23, 0 }
  0x6c   : > { %v1563_v8 = vpack.c.bf16 %v522_v6, %v521_v5  ;;  %v491_v11 = vld [vmem:[#allocation5 + $0x10] sm:$0xff]  ;;  %1532 = vmatprep.subr.bf16.mxu0 %v1531_v3  ;;  %v1535_v12 = vpack.c.bf16 %v508_v10, %v507_v9  ;;  %v492_v13 = vld [vmem:[#allocation5 + $0x18] sm:$0xff]  ;;  %v509_v18 = vld [vmem:[#allocation5 + $0xa0] sm:$0xff]  ;;  %p1817_p11 = scmp.ne.s32.totalorder %s2372_s17, %s1816_s24  ;;  %s1893_s22 = smov [#allocation8]  }
  0x6d   : > { %v523_v14 = vld [vmem:[#allocation5 + $0x110] sm:$0xff]  ;;  %v524_v15 = vld [vmem:[#allocation5 + $0x118] sm:$0xff]  ;;  %1534 = vmatpush3.bf16.msra.mxu0 %v1533_v7  ;;  %v1537_v16 = vpack.c.bf16 %v492_v13, %v491_v11  ;;  %v510_v19 = vld [vmem:[#allocation5 + $0xa8] sm:$0xff]  ;;  %vm456_vm0 = vcmp.lt.s32.totalorder %v2123_v47, 7  ;;  %vm415_vm1 = vcmp.lt.s32.totalorder %v2123_v47, 1  ;;  %s1820_s26 = sshll.u32 %s1893_s22, 4  ;;  %s1821_s26 = int_to_ptr.vmem [resolvable:$false] %s1820_s26 }
  0x6e   : > { %1564 = vmatprep.subr.bf16.mxu1 %v1563_v8  ;;  %v1567_v17 = vpack.c.bf16 %v524_v15, %v523_v14  ;;  %v493_v20 = vld [vmem:[#allocation5 + $0x20] sm:$0xff]  ;;  %1536 = vmatprep.subr.bf16.mxu0 %v1535_v12  ;;  %v1539_v21 = vpack.c.bf16 %v510_v19, %v509_v18  ;;  %v494_v22 = vld [vmem:[#allocation5 + $0x28] sm:$0xff]  ;;  %v511_v26 = vld [vmem:[#allocation5 + $0xb0] sm:$0xff]  ;;  %p1818_p2 = pnand %p1817_p11, %p2440_p0  ;;  %s1822_s15 = scalar_lea.vmem %s1821_s26, 2048 }
  0x6f   : > { %1566 = vmatpush3.bf16.msra.mxu1 %v1563_v8  ;;  %v525_v23 = vld [vmem:[#allocation5 + $0x120] sm:$0xff]  ;;  %v526_v24 = vld [vmem:[#allocation5 + $0x128] sm:$0xff]  ;;  %v512_v27 = vld [vmem:[#allocation5 + $0xb8] sm:$0xff]  ;;  %v1541_v30 = vpack.c.bf16 %v494_v22, %v493_v20  ;;  %p1823_p7 = scmp.lt.s32.totalorder %s2372_s17, %s1821_s26  ;;  %p1824_p9 = scmp.lt.s32.totalorder %s1822_s15, %s1816_s24 }
  0x70   : > { %1568 = vmatprep.subr.bf16.mxu1 %v1567_v17  ;;  %v1571_v25 = vpack.c.bf16 %v526_v24, %v525_v23  ;;  %v527_v28 = vld [vmem:[#allocation5 + $0x130] sm:$0xff]  ;;  %v528_v29 = vld [vmem:[#allocation5 + $0x138] sm:$0xff]  ;;  %v1543_v31 = vpack.c.bf16 %v512_v27, %v511_v26  ;;  %v513_v35 = vld [vmem:[#allocation5 + $0xc0] sm:$0xff]  ;;  %p1819_p3 = pneg %p1818_p2 }
  0x71   : > { %1538 = vmatpush3.bf16.msra.mxu0 %v1537_v16  ;;  %v495_v32 = vld [vmem:[#allocation5 + $0x30] sm:$0xff]  ;;  %v496_v33 = vld [vmem:[#allocation5 + $0x38] sm:$0xff]  ;;  %v1575_v34 = vpack.c.bf16 %v528_v29, %v527_v28  ;;  %v514_v36 = vld [vmem:[#allocation5 + $0xc8] sm:$0xff]  ;;  %p1825_p12 = por %p1824_p9, %p1823_p7 }
  0x72   : > { %1540 = vmatprep.subr.bf16.mxu0 %v1539_v21  ;;  %v529_v38 = vld [vmem:[#allocation5 + $0x140] sm:$0xff]  ;;  %v530_v39 = vld [vmem:[#allocation5 + $0x148] sm:$0xff]  ;;  %v1545_v40 = vpack.c.bf16 %v496_v33, %v495_v32  ;;  %v1547_v41 = vpack.c.bf16 %v514_v36, %v513_v35  ;;  %v515_v45 = vld [vmem:[#allocation5 + $0xd0] sm:$0xff]  ;;  %v291_v21 = vand.u32 63, %v2123_v47 }
  0x73   : > { %1570 = vmatpush3.bf16.msra.mxu1 %v1567_v17  ;;  %v497_v42 = vld [vmem:[#allocation5 + $0x40] sm:$0xff]  ;;  %v498_v43 = vld [vmem:[#allocation5 + $0x48] sm:$0xff]  ;;  %v1579_v44 = vpack.c.bf16 %v530_v39, %v529_v38  ;;  %v516_v46 = vld [vmem:[#allocation5 + $0xd8] sm:$0xff]  ;;  %p1826_p1 = pnand %p1825_p12, %p1819_p3 }
  0x74   : > { %1572 = vmatprep.subr.bf16.mxu1 %v1571_v25  ;;  %v531_v48 = vld [vmem:[#allocation5 + $0x150] sm:$0xff]  ;;  %v532_v49 = vld [vmem:[#allocation5 + $0x158] sm:$0xff]  ;;  %v1549_v50 = vpack.c.bf16 %v498_v43, %v497_v42  ;;  %v2126_v51 = vld [vmem:[%s2113_s12] sm:$0xff]  ;;  %v1551_v53 = vpack.c.bf16 %v516_v46, %v515_v45  ;;  %vm2164_vm2 = vcmp.ne.s32.totalorder %v291_v21, 0  ;;  %v286_v45 = vadd.s32 56, %v2123_v47 }
  0x75   : > { %1542 = vmatpush3.bf16.msra.mxu0 %v1541_v30  ;;  %v2130_v52 = vld [vmem:[%s2113_s12 + $0x8] sm:$0xff]  ;;  %v499_v54 = vld [vmem:[#allocation5 + $0x50] sm:$0xff]  ;;  %v500_v55 = vld [vmem:[#allocation5 + $0x58] sm:$0xff]  ;;  %v448_v56 = vrot.slane %v2126_v51, 1  ;;  %v1583_v58 = vpack.c.bf16 %v532_v49, %v531_v48  ;;  %601 = vmatprep.mubr.f32.mxu0 %v2126_v51  ;;  %v407_v20 = vrot.slane %v2126_v51, 7 }
  0x76   : > { %1544 = vmatprep.subr.bf16.mxu0 %v1543_v31  ;;  %v449_v57 = vrot.slane %v2130_v52, 1  ;;  %v517_v59 = vld [vmem:[#allocation5 + $0xe0] sm:$0xff]  ;;  %v518_v60 = vld [vmem:[#allocation5 + $0xe8] sm:$0xff]  ;;  %v1553_v0 = vpack.c.bf16 %v500_v55, %v499_v54  ;;  %v519_v5 = vld [vmem:[#allocation5 + $0xf0] sm:$0xff]  ;;  %v408_v32 = vrot.slane %v2130_v52, 7  ;;  %v340_v55 = vand.u32 63, %v286_v45 }
  0x77   : > { %1574 = vmatpush3.bf16.msra.mxu1 %v1571_v25  ;;  %v533_v61 = vld [vmem:[#allocation5 + $0x160] sm:$0xff]  ;;  %v534_v62 = vld [vmem:[#allocation5 + $0x168] sm:$0xff]  ;;  %v1555_v1 = vpack.c.bf16 %v518_v60, %v517_v59  ;;  %v520_v6 = vld [vmem:[#allocation5 + $0xf8] sm:$0xff] }
  0x78   : > { %1576 = vmatprep.subr.bf16.mxu1 %v1575_v34  ;;  %v463_v63 = vsel %vm456_vm0, %v448_v56, %v449_v57  ;;  %v501_v2 = vld [vmem:[#allocation5 + $0x60] sm:$0xff]  ;;  %v502_v3 = vld [vmem:[#allocation5 + $0x68] sm:$0xff]  ;;  %v1587_v4 = vpack.c.bf16 %v534_v62, %v533_v61  ;;  %v535_v7 = vld [vmem:[#allocation5 + $0x170] sm:$0xff]  ;;  %v1559_v10 = vpack.c.bf16 %v520_v6, %v519_v5  ;;  %vm2207_vm3 = vcmp.ne.s32.totalorder %v340_v55, 63 }
  0x79   : > { %1546 = vmatpush3.bf16.msra.mxu0 %v1545_v40  ;;  %1475 = vmatprep.mubr.f32.mxu1 %v463_v63  ;;  %v536_v8 = vld [vmem:[#allocation5 + $0x178] sm:$0xff]  ;;  %v1557_v9 = vpack.c.bf16 %v502_v3, %v501_v2  ;;  %v503_v11 = vld [vmem:[#allocation5 + $0x70] sm:$0xff]  ;;  %v863_v17 = vld [vmem:[#allocation7 + $0x100] sm:$0xff] }
  0x7a   : > { %1548 = vmatprep.subr.bf16.mxu0 %v1547_v41  ;;  %v504_v12 = vld [vmem:[#allocation5 + $0x78] sm:$0xff]  ;;  %v1591_v14 = vpack.c.bf16 %v536_v8, %v535_v7  ;;  %v2143_v15 = vld [vmem:[%s2113_s12 + $0x10] sm:$0xff]  ;;  %v864_v18 = vld [vmem:[#allocation7 + $0x108] sm:$0xff]  ;;  %v422_v41 = vsel %vm415_vm1, %v407_v20, %v408_v32 }
  0x7b   : > { %1578 = vmatpush3.bf16.msra.mxu1 %v1575_v34  ;;  %v2140_v13 = vld [vmem:[%s2113_s12 + $0x38] sm:$0xff]  ;;  %v1561_v19 = vpack.c.bf16 %v504_v12, %v503_v11  ;;  %v450_v23 = vrot.slane %v2143_v15, 1  ;;  %v2155_v25 = vld [vmem:[%s2113_s12 + $0x20] sm:$0xff]  ;;  %v1627_v26 = vpack.c.bf16 %v864_v18, %v863_v17  ;;  %v2158_v27 = vld [vmem:[%s2113_s12 + $0x28] sm:$0xff]  ;;  %v409_v42 = vrot.slane %v2143_v15, 7 }
  0x7c   : > { %1580 = vmatprep.subr.bf16.mxu1 %v1579_v44  ;;  %v2146_v16 = vld [vmem:[%s2113_s12 + $0x18] sm:$0xff]  ;;  %v414_v22 = vrot.slane %v2140_v13, 7  ;;  %v865_v28 = vld [vmem:[#allocation7 + $0x110] sm:$0xff]  ;;  %v452_v34 = vrot.slane %v2155_v25, 1  ;;  %v453_v36 = vrot.slane %v2158_v27, 1  ;;  %v867_v39 = vld [vmem:[#allocation7 + $0x120] sm:$0xff] }
  0x7d   : > { %1550 = vmatpush3.bf16.msra.mxu0 %v1549_v50  ;;  %v451_v24 = vrot.slane %v2146_v16, 1  ;;  %v866_v29 = vld [vmem:[#allocation7 + $0x118] sm:$0xff]  ;;  %v462_v33 = vsel %vm456_vm0, %v449_v57, %v450_v23  ;;  %v2176_v37 = vld [vmem:[%s2113_s12 + $0x30] sm:$0xff]  ;;  %v868_v40 = vld [vmem:[#allocation7 + $0x128] sm:$0xff]  ;;  %v455_v48 = vrot.slane %v2140_v13, 1  ;;  %v421_v50 = vsel %vm415_vm1, %v408_v32, %v409_v42  ;;  %s1142_s12 = scalar_lea.sflag [#allocation4], %s2107_s14 }
  0x7e   : > { %1552 = vmatprep.subr.bf16.mxu0 %v1551_v53  ;;  %v423_v30 = vsel %vm415_vm1, %v414_v22, %v407_v20  ;;  %v1631_v38 = vpack.c.bf16 %v866_v29, %v865_v28  ;;  %v459_v46 = vsel %vm456_vm0, %v452_v34, %v453_v36  ;;  %v1635_v49 = vpack.c.bf16 %v868_v40, %v867_v39  ;;  %v869_v3 = vld [vmem:[#allocation7 + $0x130] sm:$0xff]  ;;  %v871_v6 = vld [vmem:[#allocation7 + $0x140] sm:$0xff]  ;;  %v872_v7 = vld [vmem:[#allocation7 + $0x148] sm:$0xff] }
  0x7f   : > { %1582 = vmatpush3.bf16.msra.mxu1 %v1579_v44  ;;  %v461_v35 = vsel %vm456_vm0, %v450_v23, %v451_v24  ;;  %v460_v43 = vsel %vm456_vm0, %v451_v24, %v452_v34  ;;  %v454_v44 = vrot.slane %v2176_v37, 1  ;;  %v410_v53 = vrot.slane %v2146_v16, 7  ;;  %v873_v11 = vld [vmem:[#allocation7 + $0x150] sm:$0xff]  ;;  %v832_v17 = vld [vmem:[#allocation7 + $0x8] sm:$0xff]  ;;  %v874_v18 = vld [vmem:[#allocation7 + $0x158] sm:$0xff] }
  0x80   : > { %1584 = vmatprep.subr.bf16.mxu1 %v1583_v58  ;;  %v411_v59 = vrot.slane %v2155_v25, 7  ;;  %v464_v60 = vsel %vm456_vm0, %v455_v48, %v448_v56  ;;  %v412_v63 = vrot.slane %v2158_v27, 7  ;;  %v1643_v8 = vpack.c.bf16 %v872_v7, %v871_v6  ;;  %v849_v21 = vld [vmem:[#allocation7 + $0x90] sm:$0xff]  ;;  %v875_v23 = vld [vmem:[#allocation7 + $0x160] sm:$0xff]  ;;  %v834_v28 = vld [vmem:[#allocation7 + $0x18] sm:$0xff] }
  0x81   : > { %1554 = vmatpush3.bf16.msra.mxu0 %v1553_v0  ;;  %v458_v54 = vsel %vm456_vm0, %v453_v36, %v454_v44  ;;  %v457_v57 = vsel %vm456_vm0, %v454_v44, %v455_v48  ;;  %v413_v0 = vrot.slane %v2176_v37, 7  ;;  %v1647_v20 = vpack.c.bf16 %v874_v18, %v873_v11  ;;  %v876_v29 = vld [vmem:[#allocation7 + $0x168] sm:$0xff]  ;;  %v878_v40 = vld [vmem:[#allocation7 + $0x178] sm:$0xff]  ;;  %v839_v55 = vld [vmem:[#allocation7 + $0x40] sm:$0xff] }
  0x82   : > { %1556 = vmatprep.subr.bf16.mxu0 %v1555_v1  ;;  %v419_v62 = vsel %vm415_vm1, %v410_v53, %v411_v59  ;;  %v418_v56 = vsel %vm415_vm1, %v411_v59, %v412_v63  ;;  %v1651_v32 = vpack.c.bf16 %v876_v29, %v875_v23  ;;  %v852_v34 = vld [vmem:[#allocation7 + $0xa8] sm:$0xff]  ;;  %v854_v44 = vld [vmem:[#allocation7 + $0xb8] sm:$0xff]  ;;  %v857_v59 = vld [vmem:[#allocation7 + $0xd0] sm:$0xff] }
  0x83   : > { %1586 = vmatpush3.bf16.msra.mxu1 %v1583_v58  ;;  %v420_v58 = vsel %vm415_vm1, %v409_v42, %v410_v53  ;;  %v417_v1 = vsel %vm415_vm1, %v412_v63, %v413_v0  ;;  %v416_v2 = vsel %vm415_vm1, %v413_v0, %v414_v22  ;;  %v850_v22 = vld [vmem:[#allocation7 + $0x98] sm:$0xff]  ;;  %v836_v39 = vld [vmem:[#allocation7 + $0x28] sm:$0xff]  ;;  %v841_v63 = vld [vmem:[#allocation7 + $0x50] sm:$0xff] }
  0x84   : > { %1588 = vmatprep.subr.bf16.mxu1 %v1587_v4  ;;  %v1599_v24 = vpack.c.bf16 %v850_v22, %v849_v21  ;;  %v838_v48 = vld [vmem:[#allocation7 + $0x38] sm:$0xff]  ;;  %v856_v53 = vld [vmem:[#allocation7 + $0xc8] sm:$0xff]  ;;  %v861_v7 = vld [vmem:[#allocation7 + $0xf0] sm:$0xff] }
  0x85   : > { %1558 = vmatpush3.bf16.msra.mxu0 %v1557_v9  ;;  %v847_v9 = vld [vmem:[#allocation7 + $0x80] sm:$0xff]  ;;  %v846_v11 = vld [vmem:[#allocation7 + $0x78] sm:$0xff] }
  0x86   : > { %1560 = vmatprep.subr.bf16.mxu0 %v1559_v10  ;;  %v848_v10 = vld [vmem:[#allocation7 + $0x88] sm:$0xff]  ;;  %v2232_v21 = vld [vmem:[%s2420_s3] ss:$0 sm:$0xff] }
  0x87   : > { %1590 = vmatpush3.bf16.msra.mxu1 %v1587_v4  ;;  %v870_v4 = vld [vmem:[#allocation7 + $0x138] sm:$0xff]  ;;  %v1595_v12 = vpack.c.bf16 %v848_v10, %v847_v9  ;;  %v845_v10 = vld [vmem:[#allocation7 + $0x70] sm:$0xff] }
  0x88   : > { %1592 = vmatprep.subr.bf16.mxu1 %v1591_v14  ;;  %v1639_v5 = vpack.c.bf16 %v870_v4, %v869_v3  ;;  %v843_v4 = vld [vmem:[#allocation7 + $0x60] sm:$0xff] }
  0x89   : > { %1562 = vmatpush3.bf16.msra.mxu0 %v1561_v19 }
  0x8a   : > { %1596 = vmatprep.subr.bf16.mxu0 %v1595_v12  ;;  %v1625_v12 = vpack.c.bf16 %v846_v11, %v845_v10 }
  0x8b   : > { %1594 = vmatpush3.bf16.msra.mxu1 %v1591_v14  ;;  %v831_v14 = vld [vmem:[#allocation7] sm:$0xff] }
  0x8c   : > { %1628 = vmatprep.subr.bf16.mxu1 %v1627_v26  ;;  %1263 = vmatmul.mubr.msk.f32.vlgmr.msra.gmra.mrb[0].mxu0 %vm2164_vm2, %v423_v30  ;;  %v1597_v19 = vpack.c.bf16 %v832_v17, %v831_v14 }
  0x8d   : > { %606 = vmatprep.mubr.f32.mxu0 %v2130_v52 }
  0x8e   : > { %1476 = vmatmul.mubr.f32.vlgmr.msra.gmra.mrb[0].mxu1 %v462_v33  ;;  %1598 = vmatpush3.bf16.msra.mxu0 %v1597_v19  ;;  %v851_v33 = vld [vmem:[#allocation7 + $0xa0] sm:$0xff] }
  0x8f   : > { %1478 = vmatprep.mubr.f32.mxu1 %v461_v35  ;;  %1630 = vmatpush3.bf16.msra.mxu1 %v1627_v26  ;;  %v833_v26 = vld [vmem:[#allocation7 + $0x10] sm:$0xff]  ;;  %v1603_v36 = vpack.c.bf16 %v852_v34, %v851_v33 }
  0x90   : > { %1632 = vmatprep.subr.bf16.mxu1 %v1631_v38  ;;  %607 = vmatmul.mubr.f32.gmra.mrb[2].mxu0 %v422_v41  ;;  %v1601_v30 = vpack.c.bf16 %v834_v28, %v833_v26  ;;  %v877_v35 = vld [vmem:[#allocation7 + $0x170] sm:$0xff] }
  0x91   : > { %611 = vmatprep.mubr.f32.mxu0 %v2143_v15  ;;  %1600 = vmatprep.subr.bf16.mxu0 %v1599_v24  ;;  %v1655_v42 = vpack.c.bf16 %v878_v40, %v877_v35  ;;  %v2237_v24 = vld [vmem:[%s2420_s3 + $0x1] ss:$0 sm:$0xff] }
  0x92   : > { %1479 = vmatmul.mubr.f32.gmra.mrb[2].mxu1 %v460_v43  ;;  %1602 = vmatpush3.bf16.msra.mxu0 %v1601_v30  ;;  %v853_v43 = vld [vmem:[#allocation7 + $0xb0] sm:$0xff] }
  0x93   : > { %1481 = vmatprep.mubr.f32.mxu1 %v459_v46  ;;  %1634 = vmatpush3.bf16.msra.mxu1 %v1631_v38  ;;  %v835_v38 = vld [vmem:[#allocation7 + $0x20] sm:$0xff]  ;;  %v1607_v45 = vpack.c.bf16 %v854_v44, %v853_v43  ;;  %v837_v46 = vld [vmem:[#allocation7 + $0x30] sm:$0xff] }
  0x94   : > { %1636 = vmatprep.subr.bf16.mxu1 %v1635_v49  ;;  %612 = vmatmul.mubr.f32.gmra.mrb[4].mxu0 %v421_v50  ;;  %v1605_v41 = vpack.c.bf16 %v836_v39, %v835_v38  ;;  %v855_v50 = vld [vmem:[#allocation7 + $0xc0] sm:$0xff] }
  0x95   : > { %616 = vmatprep.mubr.f32.mxu0 %v2146_v16  ;;  %1604 = vmatprep.subr.bf16.mxu0 %v1603_v36 }
  0x96   : > { %1482 = vmatmul.mubr.f32.gmra.mrb[4].mxu1 %v458_v54  ;;  %1606 = vmatpush3.bf16.msra.mxu0 %v1605_v41  ;;  %v1611_v54 = vpack.c.bf16 %v856_v53, %v855_v50 }
  0x97   : > { %1484 = vmatprep.mubr.f32.mxu1 %v457_v57  ;;  %1638 = vmatpush3.bf16.msra.mxu1 %v1635_v49  ;;  %v1609_v49 = vpack.c.bf16 %v838_v48, %v837_v46  ;;  %v840_v57 = vld [vmem:[#allocation7 + $0x48] sm:$0xff] }
  0x98   : > { %617 = vmatmul.mubr.f32.gmra.mrb[6].mxu0 %v420_v58  ;;  %1640 = vmatprep.subr.bf16.mxu1 %v1639_v5  ;;  %v1613_v58 = vpack.c.bf16 %v840_v57, %v839_v55 }
  0x99   : > { %621 = vmatprep.mubr.f32.mxu0 %v2155_v25  ;;  %1608 = vmatprep.subr.bf16.mxu0 %v1607_v45 }
  0x9a   : > { %1485 = vmatmul.mubr.msk.f32.gmra.mrb[6].mxu1 %vm2207_vm3, %v464_v60  ;;  %1610 = vmatpush3.bf16.msra.mxu0 %v1609_v49  ;;  %v858_v60 = vld [vmem:[#allocation7 + $0xd8] sm:$0xff] }
  0x9b   : > { %1642 = vmatpush3.bf16.msra.mxu1 %v1639_v5  ;;  %1612 = vmatprep.subr.bf16.mxu0 %v1611_v54  ;;  %v844_v5 = vld [vmem:[#allocation7 + $0x68] sm:$0xff] }
  0x9c   : > { %622 = vmatmul.mubr.f32.gmra.mrb[8].mxu0 %v419_v62  ;;  %1644 = vmatprep.subr.bf16.mxu1 %v1643_v8  ;;  %v1615_v62 = vpack.c.bf16 %v858_v60, %v857_v59  ;;  %v1621_v6 = vpack.c.bf16 %v844_v5, %v843_v4 }
  0x9d   : > { %626 = vmatprep.mubr.f32.mxu0 %v2158_v27 }
  0x9e   : > { %1614 = vmatpush3.bf16.msra.mxu0 %v1613_v58 }
  0x9f   : > { %1646 = vmatpush3.bf16.msra.mxu1 %v1643_v8  ;;  %1616 = vmatprep.subr.bf16.mxu0 %v1615_v62  ;;  %v862_v8 = vld [vmem:[#allocation7 + $0xf8] sm:$0xff] }
  0xa0   : > { %627 = vmatmul.mubr.f32.gmra.mrb[10].mxu0 %v418_v56  ;;  %1648 = vmatprep.subr.bf16.mxu1 %v1647_v20  ;;  %v842_v56 = vld [vmem:[#allocation7 + $0x58] sm:$0xff]  ;;  %v1623_v9 = vpack.c.bf16 %v862_v8, %v861_v7 }
  0xa1   : > { %631 = vmatprep.mubr.f32.mxu0 %v2176_v37  ;;  %v1617_v0 = vpack.c.bf16 %v842_v56, %v841_v63 }
  0xa3   : > { %1650 = vmatpush3.bf16.msra.mxu1 %v1647_v20  ;;  %1618 = vmatpush3.bf16.msra.mxu0 %v1617_v0 }
  0xa4   : > { %632 = vmatmul.mubr.f32.gmra.mrb[12].mxu0 %v417_v1  ;;  %1652 = vmatprep.subr.bf16.mxu1 %v1651_v32  ;;  %v859_v1 = vld [vmem:[#allocation7 + $0xe0] sm:$0xff] }
  0xa5   : > { %636 = vmatprep.mubr.f32.mxu0 %v2140_v13 }
  0xa7   : > { %1654 = vmatpush3.bf16.msra.mxu1 %v1651_v32 }
  0xa8   : > { %637 = vmatmul.mubr.f32.gmra.mrb[14].mxu0 %v416_v2  ;;  %1656 = vmatprep.subr.bf16.mxu1 %v1655_v42  ;;  %v860_v2 = vld [vmem:[#allocation7 + $0xe8] sm:$0xff] }
  0xa9   : > { %v1619_v3 = vpack.c.bf16 %v860_v2, %v859_v1 }
  0xab   : > { %1658 = vmatpush3.bf16.msra.mxu1 %v1655_v42  ;;  %1620 = vmatprep.subr.bf16.mxu0 %v1619_v3 }
  0xac   : > { %1622 = vmatpush3.bf16.msra.mxu0 %v1621_v6 }
  0xad   : > { %1624 = vmatprep.subr.bf16.mxu0 %v1623_v9 }
  0xb0   : > { %1626 = vmatpush3.bf16.msra.mxu0 %v1625_v12 }
 0x15f   : > { %v1315_v14 = vpop.f32.mrb[0].mxu0 }
 0x160   : > { %v1316_v17 = vpop.f32.mrb[1].mxu0 }
 0x161   : > { %v1477_v18 = vpop.f32.mrb[0].mxu1  ;;  %v1317_v19 = vadd.f32 %v1316_v17, %v1315_v14 }
 0x162   : > { %v708_v20 = vpop.f32.mrb[1].mxu1 }
 0x163   : > { %v709_v22 = vadd.f32 %v1317_v19, %v708_v20  ;;  %v1318_v23 = vpop.f32.mrb[2].mxu0 }
 0x164   : > { %v1319_v26 = vpop.f32.mrb[3].mxu0 }
 0x165   : > { %v1480_v28 = vpop.f32.mrb[2].mxu1  ;;  %v753_v29 = vmul.f32 %v2232_v21, %v709_v22  ;;  %v1320_v30 = vadd.f32 %v1319_v26, %v1318_v23 }
 0x166   : > { %v718_v32 = vpop.f32.mrb[3].mxu1 }
 0x167   : > { %v714_v33 = vadd.f32 %v1477_v18, %v1320_v30  ;;  %v1321_v34 = vpop.f32.mrb[4].mxu0  ;;  %v767_v35 = vadd.f32 %v2237_v24, %v753_v29 }
 0x168   : > { %v1322_v36 = vpop.f32.mrb[5].mxu0 }
 0x169   : > { %v1483_v38 = vpop.f32.mrb[4].mxu1  ;;  %v754_v39 = vmul.f32 %v2232_v21, %v714_v33  ;;  %v1323_v40 = vadd.f32 %v1322_v36, %v1321_v34  ;;  %v2242_v41 = vmax.f32 %v767_v35, 0.0 }
 0x16a   : > { %v728_v42 = vpop.f32.mrb[5].mxu1 }
 0x16b   : > { %v768_v43 = vadd.f32 %v2237_v24, %v754_v39  ;;  %v719_v44 = vadd.f32 %v1323_v40, %v718_v32  ;;  %v1324_v45 = vpop.f32.mrb[6].mxu0  ;;  %943 = vmatprep.mubr.f32.mxu0 %v2242_v41  ;;  %v807_v55 = vrot.slane %v2242_v41, 1  ;;  %v783_v63 = vrot.slane %v2242_v41, 7 }
 0x16c   : > { %v1325_v46 = vpop.f32.mrb[7].mxu0 }
 0x16d   : > { %v1486_v48 = vpop.f32.mrb[6].mxu1  ;;  %v2246_v49 = vmax.f32 %v768_v43, 0.0  ;;  %v755_v50 = vmul.f32 %v2232_v21, %v719_v44  ;;  %v1326_v53 = vadd.f32 %v1325_v46, %v1324_v45 }
 0x16e   : > { %v738_v54 = vpop.f32.mrb[7].mxu1 }
 0x16f   : > { %v769_v57 = vadd.f32 %v2237_v24, %v755_v50  ;;  %v724_v58 = vadd.f32 %v1480_v28, %v1326_v53  ;;  %v1327_v59 = vpop.f32.mrb[8].mxu0  ;;  %v808_v60 = vrot.slane %v2246_v49, 1  ;;  %v784_v62 = vrot.slane %v2246_v49, 7 }
 0x170   : > { %v1328_v56 = vpop.f32.mrb[9].mxu0 }
 0x171   : > { %v2254_v0 = vmax.f32 %v769_v57, 0.0  ;;  %v756_v1 = vmul.f32 %v2232_v21, %v724_v58  ;;  %v1329_v2 = vadd.f32 %v1328_v56, %v1327_v59  ;;  %v821_v3 = vsel %vm456_vm0, %v807_v55, %v808_v60 }
 0x172   : > { %1519 = vmatprep.mubr.f32.mxu1 %v821_v3  ;;  %v2265_v4 = vsel %vm415_vm1, %v783_v63, %v784_v62 }
 0x173   : > { %v809_v5 = vrot.slane %v2254_v0, 1  ;;  %v770_v6 = vadd.f32 %v2237_v24, %v756_v1  ;;  %v729_v7 = vadd.f32 %v1329_v2, %v728_v42  ;;  %v1330_v8 = vpop.f32.mrb[10].mxu0  ;;  %v785_v9 = vrot.slane %v2254_v0, 7 }
 0x174   : > { %v1331_v10 = vpop.f32.mrb[11].mxu0 }
 0x175   : > { %v778_v11 = vmax.f32 %v770_v6, 0.0  ;;  %v757_v12 = vmul.f32 %v2232_v21, %v729_v7  ;;  %v1332_v14 = vadd.f32 %v1331_v10, %v1330_v8  ;;  %v820_v17 = vsel %vm456_vm0, %v808_v60, %v809_v5 }
 0x176   : > { %1520 = vmatmul.mubr.f32.vlgmr.msra.gmra.mrb[8].mxu1 %v820_v17  ;;  %v796_v18 = vsel %vm415_vm1, %v784_v62, %v785_v9 }
 0x177   : > { %v771_v19 = vadd.f32 %v2237_v24, %v757_v12  ;;  %v734_v20 = vadd.f32 %v1483_v38, %v1332_v14  ;;  %v1333_v22 = vpop.f32.mrb[12].mxu0  ;;  %v810_v23 = vrot.slane %v778_v11, 1  ;;  %v786_v26 = vrot.slane %v778_v11, 7  ;;  %v2322_v14 = vld [vmem:[%s2421_s4] ss:$0 sm:$0xff] }
 0x178   : > { %v1334_v28 = vpop.f32.mrb[13].mxu0 }
 0x179   : > { %v779_v29 = vmax.f32 %v771_v19, 0.0  ;;  %v758_v30 = vmul.f32 %v2232_v21, %v734_v20  ;;  %v1335_v32 = vadd.f32 %v1334_v28, %v1333_v22  ;;  %v819_v33 = vsel %vm456_vm0, %v809_v5, %v810_v23  ;;  %v2327_v19 = vld [vmem:[%s2421_s4 + $0x1] ss:$0 sm:$0xff] }
 0x17a   : > { %1522 = vmatprep.mubr.f32.mxu1 %v819_v33  ;;  %v795_v34 = vsel %vm415_vm1, %v785_v9, %v786_v26 }
 0x17b   : > { %v772_v35 = vadd.f32 %v2237_v24, %v758_v30  ;;  %v739_v36 = vadd.f32 %v1335_v32, %v738_v54  ;;  %v1336_v39 = vpop.f32.mrb[14].mxu0  ;;  %v811_v38 = vrot.slane %v779_v29, 1  ;;  %v787_v40 = vrot.slane %v779_v29, 7 }
 0x17c   : > { %v1337_v42 = vpop.f32.mrb[15].mxu0 }
 0x17d   : > { %v780_v43 = vmax.f32 %v772_v35, 0.0  ;;  %v759_v44 = vmul.f32 %v2232_v21, %v739_v36  ;;  %v1338_v45 = vadd.f32 %v1337_v42, %v1336_v39  ;;  %v818_v46 = vsel %vm456_vm0, %v810_v23, %v811_v38 }
 0x17e   : > { %1523 = vmatmul.mubr.f32.gmra.mrb[10].mxu1 %v818_v46  ;;  %v794_v50 = vsel %vm415_vm1, %v786_v26, %v787_v40 }
 0x17f   : > { %v773_v53 = vadd.f32 %v2237_v24, %v759_v44  ;;  %v744_v57 = vadd.f32 %v1486_v48, %v1338_v45  ;;  %v812_v58 = vrot.slane %v780_v43, 1  ;;  %v788_v54 = vrot.slane %v780_v43, 7 }
 0x181   : > { %v781_v59 = vmax.f32 %v773_v53, 0.0  ;;  %v760_v60 = vmul.f32 %v2232_v21, %v744_v57  ;;  %v817_v62 = vsel %vm456_vm0, %v811_v38, %v812_v58  ;;  %v793_v56 = vsel %vm415_vm1, %v787_v40, %v788_v54 }
 0x182   : > { %1525 = vmatprep.mubr.f32.mxu1 %v817_v62 }
 0x183   : > { %v774_v1 = vadd.f32 %v2237_v24, %v760_v60  ;;  %v813_v2 = vrot.slane %v781_v59, 1  ;;  %v789_v3 = vrot.slane %v781_v59, 7 }
 0x185   : > { %v782_v5 = vmax.f32 %v774_v1, 0.0  ;;  %v816_v48 = vsel %vm456_vm0, %v812_v58, %v813_v2  ;;  %v792_v6 = vsel %vm415_vm1, %v788_v54, %v789_v3 }
 0x186   : > { %1526 = vmatmul.mubr.f32.gmra.mrb[12].mxu1 %v816_v48 }
 0x187   : > { %v790_v21 = vrot.slane %v782_v5, 7  ;;  %v814_v7 = vrot.slane %v782_v5, 1 }
 0x189   : > { %v798_v8 = vsel %vm415_vm1, %v790_v21, %v783_v63  ;;  %v815_v24 = vsel %vm456_vm0, %v813_v2, %v814_v7  ;;  %v822_v9 = vsel %vm456_vm0, %v814_v7, %v807_v55  ;;  %v791_v10 = vsel %vm415_vm1, %v789_v3, %v790_v21 }
 0x18a   : > { %1269 = vmatmul.mubr.msk.f32.vlgmr.msra.gmra.mrb[16].mxu0 %vm2164_vm2, %v798_v8  ;;  %1528 = vmatprep.mubr.f32.mxu1 %v815_v24 }
 0x18b   : > { %948 = vmatprep.mubr.f32.mxu0 %v2246_v49  ;;  %1529 = vmatmul.mubr.msk.f32.gmra.mrb[14].mxu1 %vm2207_vm3, %v822_v9 }
 0x18e   : > { %949 = vmatmul.mubr.f32.gmra.mrb[18].mxu0 %v2265_v4 }
 0x18f   : > { %953 = vmatprep.mubr.f32.mxu0 %v2254_v0 }
 0x192   : > { %954 = vmatmul.mubr.f32.gmra.mrb[20].mxu0 %v796_v18 }
 0x193   : > { %958 = vmatprep.mubr.f32.mxu0 %v778_v11 }
 0x196   : > { %959 = vmatmul.mubr.f32.gmra.mrb[22].mxu0 %v795_v34 }
 0x197   : > { %963 = vmatprep.mubr.f32.mxu0 %v779_v29 }
 0x19a   : > { %964 = vmatmul.mubr.f32.gmra.mrb[24].mxu0 %v794_v50 }
 0x19b   : > { %968 = vmatprep.mubr.f32.mxu0 %v780_v43 }
 0x19e   : > { %969 = vmatmul.mubr.f32.gmra.mrb[26].mxu0 %v793_v56 }
 0x19f   : > { %973 = vmatprep.mubr.f32.mxu0 %v781_v59 }
 0x1a2   : > { %974 = vmatmul.mubr.f32.gmra.mrb[28].mxu0 %v792_v6 }
 0x1a3   : > { %978 = vmatprep.mubr.f32.mxu0 %v782_v5 }
 0x1a6   : > { %979 = vmatmul.mubr.f32.gmra.mrb[30].mxu0 %v791_v10 }
 0x249   : > { %v1521_v47 = vpop.f32.mrb[8].mxu1 }
 0x24a   : > { %v1050_v31 = vpop.f32.mrb[9].mxu1 }
 0x251   : > { %v1524_v41 = vpop.f32.mrb[10].mxu1 }
 0x252   : > { %v1060_v61 = vpop.f32.mrb[11].mxu1 }
 0x259   : > { %v1527_v49 = vpop.f32.mrb[12].mxu1 }
 0x25a   : > { %v1070_v55 = vpop.f32.mrb[13].mxu1 }
 0x25d   : > { %v1395_v63 = vpop.f32.mrb[16].mxu0 }
 0x25e   : > { %v1396_v4 = vpop.f32.mrb[17].mxu0  ;;  %v2317_v0 = vpop.f32.mrb[14].mxu1 }
 0x25f   : > { %v1397_v11 = vadd.f32 %v1396_v4, %v1395_v63  ;;  %v1080_v12 = vpop.f32.mrb[15].mxu1 }
 0x261   : > { %v1051_v17 = vadd.f32 %v1397_v11, %v1050_v31  ;;  %v1398_v18 = vpop.f32.mrb[18].mxu0 }
 0x262   : > { %v1399_v20 = vpop.f32.mrb[19].mxu0 }
 0x263   : > { %v1095_v22 = vmul.f32 %v2322_v14, %v1051_v17  ;;  %v1400_v23 = vadd.f32 %v1399_v20, %v1398_v18 }
 0x265   : > { %v1109_v26 = vadd.f32 %v2327_v19, %v1095_v22  ;;  %v1056_v28 = vadd.f32 %v1521_v47, %v1400_v23  ;;  %v1401_v29 = vpop.f32.mrb[20].mxu0 }
 0x266   : > { %v1402_v30 = vpop.f32.mrb[21].mxu0 }
 0x267   : > { %v1117_v32 = vadd.f32 %v1109_v26, %v2126_v51  ;;  %v1096_v33 = vmul.f32 %v2322_v14, %v1056_v28  ;;  %v1403_v34 = vadd.f32 %v1402_v30, %v1401_v29 }
 0x269   : > { %v1125_v35 = vmax.f32 %v1117_v32, 0.0  ;;  %v1110_v36 = vadd.f32 %v2327_v19, %v1096_v33  ;;  %v1061_v39 = vadd.f32 %v1403_v34, %v1060_v61  ;;  %v1404_v38 = vpop.f32.mrb[22].mxu0 }
 0x26a   : > { %v1405_v40 = vpop.f32.mrb[23].mxu0 }
 0x26b   : > { %1133 = vst [vmem:[%s2336_s30] sm:$0xff] %v1125_v35  ;;  %v1118_v42 = vadd.f32 %v1110_v36, %v2130_v52  ;;  %v1097_v43 = vmul.f32 %v2322_v14, %v1061_v39  ;;  %v1406_v51 = vadd.f32 %v1405_v40, %v1404_v38 }
 0x26d   : > { %v1126_v44 = vmax.f32 %v1118_v42, 0.0  ;;  %v1111_v45 = vadd.f32 %v2327_v19, %v1097_v43  ;;  %v1066_v46 = vadd.f32 %v1524_v41, %v1406_v51  ;;  %v1407_v50 = vpop.f32.mrb[24].mxu0 }
 0x26e   : > { %v1408_v53 = vpop.f32.mrb[25].mxu0 }
 0x26f   : > { %1134 = vst [vmem:[%s2336_s30 + $0x8] sm:$0xff] %v1126_v44  ;;  %v1119_v57 = vadd.f32 %v1111_v45, %v2143_v15  ;;  %v1098_v58 = vmul.f32 %v2322_v14, %v1066_v46  ;;  %v1409_v54 = vadd.f32 %v1408_v53, %v1407_v50 }
 0x271   : > { %v1127_v59 = vmax.f32 %v1119_v57, 0.0  ;;  %v1112_v52 = vadd.f32 %v2327_v19, %v1098_v58  ;;  %v1071_v60 = vadd.f32 %v1409_v54, %v1070_v55  ;;  %v1410_v62 = vpop.f32.mrb[26].mxu0 }
 0x272   : > { %v1411_v56 = vpop.f32.mrb[27].mxu0 }
 0x273   : > { %1135 = vst [vmem:[%s2336_s30 + $0x10] sm:$0xff] %v1127_v59  ;;  %v1120_v1 = vadd.f32 %v1112_v52, %v2146_v16  ;;  %v1099_v2 = vmul.f32 %v2322_v14, %v1071_v60  ;;  %v1412_v3 = vadd.f32 %v1411_v56, %v1410_v62 }
 0x275   : > { %v1128_v5 = vmax.f32 %v1120_v1, 0.0  ;;  %v1113_v15 = vadd.f32 %v2327_v19, %v1099_v2  ;;  %v1076_v48 = vadd.f32 %v1527_v49, %v1412_v3  ;;  %v1413_v6 = vpop.f32.mrb[28].mxu0 }
 0x276   : > { %v1414_v21 = vpop.f32.mrb[29].mxu0 }
 0x277   : > { %1136 = vst [vmem:[%s2336_s30 + $0x18] sm:$0xff] %v1128_v5  ;;  %v1121_v7 = vadd.f32 %v1113_v15, %v2155_v25  ;;  %v1100_v8 = vmul.f32 %v2322_v14, %v1076_v48  ;;  %v1415_v24 = vadd.f32 %v1414_v21, %v1413_v6 }
 0x279   : > { %v1129_v9 = vmax.f32 %v1121_v7, 0.0  ;;  %v1114_v16 = vadd.f32 %v2327_v19, %v1100_v8  ;;  %v1081_v10 = vadd.f32 %v1415_v24, %v1080_v12  ;;  %v1416_v47 = vpop.f32.mrb[30].mxu0 }
 0x27a   : > { %v1417_v31 = vpop.f32.mrb[31].mxu0 }
 0x27b   : > { %1137 = vst [vmem:[%s2336_s30 + $0x20] sm:$0xff] %v1129_v9  ;;  %v1122_v41 = vadd.f32 %v1114_v16, %v2158_v27  ;;  %v1101_v61 = vmul.f32 %v2322_v14, %v1081_v10  ;;  %v1418_v49 = vadd.f32 %v1417_v31, %v1416_v47 }
 0x27d   : > { %v1130_v25 = vmax.f32 %v1122_v41, 0.0  ;;  %v1115_v55 = vadd.f32 %v2327_v19, %v1101_v61  ;;  %v1086_v63 = vadd.f32 %v2317_v0, %v1418_v49 }
 0x27f   : > { %1138 = vst [vmem:[%s2336_s30 + $0x28] sm:$0xff] %v1130_v25  ;;  %v1123_v4 = vadd.f32 %v1115_v55, %v2176_v37  ;;  %v1102_v11 = vmul.f32 %v2322_v14, %v1086_v63 }
 0x281   : > { %v1131_v12 = vmax.f32 %v1123_v4, 0.0  ;;  %v1116_v17 = vadd.f32 %v2327_v19, %v1102_v11 }
 0x283   : > { %1139 = vst [vmem:[%s2336_s30 + $0x30] sm:$0xff] %v1131_v12  ;;  %v1124_v27 = vadd.f32 %v1116_v17, %v2140_v13 }
 0x285   : > { %v1132_v37 = vmax.f32 %v1124_v27, 0.0 }
 0x287   : > { %1140 = vst [vmem:[%s2336_s30 + $0x38] sm:$0xff] %v1132_v37 }
 0x288   : > { %1829 = shalt.err (!%p1826_p1)
}
 0x289   : > { %s1830_s16 = scalar_lea.hbm %s2370_s8, 1024  ;;  %s1834_s13 = scalar_lea.hbm %s2422_s5, 2048 }
 0x28a   : > { %p1831_p13 = scmp.ne.s32.totalorder %s2370_s8, %s1830_s16  ;;  %p1835_p4 = scmp.lt.u32.totalorder %s2370_s8, %s2422_s5 }
 0x28b   : > { %p1836_p5 = scmp.lt.u32.totalorder %s1834_s13, %s1830_s16  ;;  %p1838_p11 = scmp.lt.u32.totalorder %s1830_s16, %s2370_s8 }
 0x28c   : > { %p1832_p6 = pnand %p1831_p13, %p2440_p0 }
 0x28d   : > { %p1837_p8 = por %p1836_p5, %p1835_p4 }
 0x28e   : > { %p1833_p10 = pneg %p1832_p6 }
 0x28f   : > { %p1839_p2 = por %p1838_p11, %p1837_p8 }
 0x291   : > { %p1840_p3 = pnand %p1839_p2, %p1833_p10 }
 0x293   : > { %1843 = shalt.err (!%p1840_p3)
}
 0x294   : > { %s1894_s11 = smov 128   ;;  %s1895_s7 = smov 8  }
 0x295   : > { %1669 = dma.vmem_to_hbm [thread:$0]  (%p2440_p0), %s2372_s17, 1024, %s2370_s8, %s1142_s12, %s1894_s11, %s1894_s11, %s1895_s7  }
 0x296 PF: > { %s1170_s6 = sand.u32 1, %s1874_s18   ;;  %p2441_p7 = scmp.ne.s32.totalorder %s2427_s25, 0 }
 0x297   : > { %p2442_p9 = scmp.ge.s32.totalorder %s1886_s21, 2  ;;  %s1171_s24 = scalar_lea.sflag [#allocation4], %s1170_s6 }
 0x299   : > { %p1683_p12 = pnand %p2442_p9, %p2441_p7 }
 0x29b   : > { %1869 = dma.done.wait (!%p1683_p12), %s1171_s24, 1024  }
 0x29c   : > { %1871 = vsyncadd (!%p1683_p12), %s1171_s24, 4294966272  ;;  %p19_p1 = scmp.ge.s32.totalorder %s2042_s29, 4   ;;  %s2443_s18 = smov %s1878_s19 }
 0x29d   : > { %s2444_s19 = smov %s1882_s20  ;;  %s2445_s20 = smov %s2058_s27 }
 0x29e   : > { %s2446_s21 = smov %s2042_s29  ;;  %21 = sbr.rel (!%p19_p1) target bundleno = 6 (0x6), region = 95 }
 0x2a5   :  { %1176 = vsyncpa [#allocation3], 1 }
 0x2a6   :  { %1178 = vsyncpa [#allocation3 + $0x1], 1 }
 0x2a7   :  { %1179 = vsyncpa [#allocation6], 1 }
 0x2a8   :  { %1180 = vsyncpa [#allocation4], 1 }
 0x2a9   :  { %1182 = vsyncpa [#allocation4 + $0x1], 1 }

</bundles_post_ra>
